<compile_context>
chip_gen: v7x
topology: tpu7x:2x2x1
jax: 0.10.0
libtpu: 0.0.40
codegen_flags: <defaults>
</compile_context>

<pallas_src>
import functools

import jax
import jax.numpy as jnp
from jax.experimental import pallas as pl
from jax.experimental.pallas import tpu as pltpu

_SUBLANES = 8        # f32 sublane granularity for the batch axis
_LANES = 128         # lane width (class padding target)
_B_TILE_MAX = 128    # max batch rows per grid step (MXU-friendly M)


def _round_up(n, m):
    return -(-n // m) * m


def _human_lstm_kernel(x_ref,        # (S, Bt, I)   time-major input tile (f32)
                       wih_t_ref,    # (I, 4H)      input->gate weights, transposed, [i,f,o,g]
                       whh_t_ref,    # (H, 4H)      hidden->gate weights, transposed, [i,f,o,g]
                       b_gates_ref,  # (1, 4H)      b_ih + b_hh (permuted), f32
                       wc_ref,       # (H, Cp)      fused fc1@fc2 weight (lane-padded)
                       bc_ref,       # (1, Cp)      fused bias (padded cols = -1e30), f32
                       out_ref):     # (Bt, Cp)     softmax probabilities (padded)
    S, Bt, I = x_ref.shape
    H = whh_t_ref.shape[0]
    mm_dtype = whh_t_ref.dtype       # f32 or bf16 (MXU operand dtype)

    # ---- Input projection for all timesteps as ONE MXU matmul, hoisted out of the
    #      recurrence.  (S, Bt, I) -> (S*Bt, I) is a layout-preserving collapse on the
    #      f32 ref (Bt is a multiple of 8); cast to the MXU operand dtype afterwards.
    x_flat = x_ref[...].reshape(S * Bt, I).astype(mm_dtype)
    gates_x = (jnp.dot(x_flat, wih_t_ref[...],
                       preferred_element_type=jnp.float32)
               + b_gates_ref[...])                              # (S*Bt, 4H) f32, bias folded

    whh_t = whh_t_ref[...]                                      # (H, 4H)
    h = jnp.zeros((Bt, H), jnp.float32)
    c = jnp.zeros((Bt, H), jnp.float32)

    # ---- Fully unrolled recurrence (S = 4, static): only h @ Whh^T is serially
    #      dependent.  Gates are pre-permuted to [i, f, o, g]: one sigmoid pass over
    #      (Bt, 3H) and one tanh over (Bt, H); activations/state stay f32.
    for t in range(S):
        g = gates_x[t * Bt:(t + 1) * Bt, :] + jnp.dot(
            h.astype(mm_dtype), whh_t, preferred_element_type=jnp.float32)
        sig = jax.nn.sigmoid(g[:, :3 * H])
        i_g = sig[:, 0 * H:1 * H]
        f_g = sig[:, 1 * H:2 * H]
        o_g = sig[:, 2 * H:3 * H]
        g_g = jnp.tanh(g[:, 3 * H:4 * H])
        c = f_g * c + i_g * g_g
        h = o_g * jnp.tanh(c)

    # ---- Fused fc1->fc2 -> softmax(dim=1).  Padded class columns carry bias -1e30 so
    #      exp() underflows to exactly 0; lane-dense (Bt, Cp) store stays unmasked.
    logits = jnp.dot(h.astype(mm_dtype), wc_ref[...],
                     preferred_element_type=jnp.float32) + bc_ref[...]
    logits = logits - jnp.max(logits, axis=1, keepdims=True)
    e = jnp.exp(logits)
    out_ref[...] = e / jnp.sum(e, axis=1, keepdims=True)        # exact divide


@functools.partial(jax.jit, static_argnames=("matmul_dtype",))
def human_lstm_forward(x_bsi, params, matmul_dtype=jnp.float32):
    """x_bsi: (batch, seq, input_size) f32, PyTorch batch_first layout.

    matmul_dtype=jnp.bfloat16 feeds the MXU native bf16 operands (v6e/v7x win) while
    keeping f32 accumulation and f32 elementwise math.
    """
    w_ih, w_hh, b_ih, b_hh, w1, b1, w2, b2 = params
    B, S, I = x_bsi.shape
    H = w_hh.shape[1]
    C = w2.shape[0]

    b_tile = min(_B_TILE_MAX, _round_up(B, _SUBLANES))   # fat, MXU-friendly batch tiles
    B_pad = _round_up(B, b_tile)
    C_pad = _round_up(C, _LANES)

    # Time-major input, batch zero-padded (padded rows sliced off below).  Kept f32 in
    # HBM; the (optional) bf16 cast happens inside the kernel after the reshape.
    x_sbi = jnp.transpose(x_bsi, (1, 0, 2)).astype(jnp.float32)        # (S, B, I)
    x_pad = jnp.pad(x_sbi, ((0, 0), (0, B_pad - B), (0, 0)))           # (S, B_pad, I)

    # Gate-row permutation [i, f, g, o] -> [i, f, o, g] so sigmoid / tanh hit
    # contiguous slices in the kernel.
    perm = jnp.concatenate([jnp.arange(0, 2 * H),          # i, f
                            jnp.arange(3 * H, 4 * H),      # o
                            jnp.arange(2 * H, 3 * H)])     # g
    wih_t = jnp.transpose(w_ih[perm]).astype(matmul_dtype)             # (I, 4H)
    whh_t = jnp.transpose(w_hh[perm]).astype(matmul_dtype)             # (H, 4H)
    b_gates = (b_ih + b_hh)[perm].reshape(1, 4 * H).astype(jnp.float32)

    # Algebraic fc1->fc2 fusion (exact: no nonlinearity between them), lane-padded.
    w2_t_pad = jnp.pad(jnp.transpose(w2).astype(jnp.float32),
                       ((0, 0), (0, C_pad - C)))                       # (H, C_pad)
    wc = jnp.dot(jnp.transpose(w1).astype(jnp.float32), w2_t_pad,
                 precision=jax.lax.Precision.HIGHEST)                  # (H, C_pad)
    bc_real = jnp.dot(b1.reshape(1, H).astype(jnp.float32), w2_t_pad,
                      precision=jax.lax.Precision.HIGHEST)             # (1, C_pad)
    bc = jnp.full((1, C_pad), -1e30, jnp.float32).at[0, :C].set(
        bc_real[0, :C] + b2.astype(jnp.float32))                       # (1, C_pad)
    wc = wc.astype(matmul_dtype)

    grid = (B_pad // b_tile,)
    out = pl.pallas_call(
        _human_lstm_kernel,
        out_shape=jax.ShapeDtypeStruct((B_pad, C_pad), jnp.float32),
        grid_spec=pltpu.PrefetchScalarGridSpec(
            num_scalar_prefetch=0,
            grid=grid,
            in_specs=[
                pl.BlockSpec((S, b_tile, I), lambda i: (0, i, 0)),     # x tile (per step)
                # Constant index maps -> pipeline keeps these VMEM-resident, no re-fetch.
                pl.BlockSpec((I, 4 * H), lambda i: (0, 0)),            # wih_t
                pl.BlockSpec((H, 4 * H), lambda i: (0, 0)),            # whh_t
                pl.BlockSpec((1, 4 * H), lambda i: (0, 0)),            # b_gates
                pl.BlockSpec((H, C_pad), lambda i: (0, 0)),            # wc (fused fc)
                pl.BlockSpec((1, C_pad), lambda i: (0, 0)),            # bc (fused bias)
            ],
            out_specs=pl.BlockSpec((b_tile, C_pad), lambda i: (i, 0)),
        ),
        compiler_params=pltpu.CompilerParams(
            dimension_semantics=("parallel",),      # batch tiles independent (megacore)
            vmem_limit_bytes=32 * 1024 * 1024,      # within v7x's 64 MiB physical VMEM
        ),
    )(x_pad, wih_t, whh_t, b_gates, wc, bc)

    return out[:B, :C]


def init_params(key, input_size, hidden_size, num_classes):
    """Deterministic init mimicking PyTorch default U(-1/sqrt(fan), 1/sqrt(fan))."""
    ks = jax.random.split(key, 8)
    k_lstm = 1.0 / jnp.sqrt(hidden_size)
    k_fc = 1.0 / jnp.sqrt(hidden_size)
    u = lambda k, shape, lim: jax.random.uniform(k, shape, jnp.float32, -lim, lim)
    w_ih = u(ks[0], (4 * hidden_size, input_size), k_lstm)
    w_hh = u(ks[1], (4 * hidden_size, hidden_size), k_lstm)
    b_ih = u(ks[2], (4 * hidden_size,), k_lstm)
    b_hh = u(ks[3], (4 * hidden_size,), k_lstm)
    w1 = u(ks[4], (hidden_size, hidden_size), k_fc)
    b1 = u(ks[5], (hidden_size,), k_fc)
    w2 = u(ks[6], (num_classes, hidden_size), k_fc)
    b2 = u(ks[7], (num_classes,), k_fc)
    return (w_ih, w_hh, b_ih, b_hh, w1, b1, w2, b2)


def reference_forward(x_bsi, params):
    """Pure-JAX reference matching PyTorch nn.LSTM(batch_first=True) semantics."""
    w_ih, w_hh, b_ih, b_hh, w1, b1, w2, b2 = params
    B, S, _ = x_bsi.shape
    H = w_hh.shape[1]
    h = jnp.zeros((B, H), jnp.float32)
    c = jnp.zeros((B, H), jnp.float32)
    for t in range(S):
        g = x_bsi[:, t, :] @ w_ih.T + b_ih + h @ w_hh.T + b_hh
        i_g = jax.nn.sigmoid(g[:, 0 * H:1 * H])
        f_g = jax.nn.sigmoid(g[:, 1 * H:2 * H])
        g_g = jnp.tanh(g[:, 2 * H:3 * H])
        o_g = jax.nn.sigmoid(g[:, 3 * H:4 * H])
        c = f_g * c + i_g * g_g
        h = o_g * jnp.tanh(c)
    out = h @ w1.T + b1
    out = out @ w2.T + b2
    return jax.nn.softmax(out, axis=1)


if __name__ == "__main__":
    # Shapes consistent with HumanLSTM(num_classes=4, input_size=8, hidden_size=32,
    # num_layers=1) and its fixed seq_length = 4.
    batch, seq, input_size, hidden_size, num_classes = 2, 4, 8, 32, 4

    key = jax.random.PRNGKey(0)
    k_x, k_p = jax.random.split(key)
    x = jax.random.normal(k_x, (batch, seq, input_size), jnp.float32)
    params = init_params(k_p, input_size, hidden_size, num_classes)

    ref = reference_forward(x, params)

    # f32 MXU-operand path (exact softmax divide; fc fusion exact up to reassociation).
    out = human_lstm_forward(x, params)
    jax.block_until_ready(out)
    assert out.shape == (batch, num_classes)
    assert jnp.allclose(out, ref, rtol=1e-3, atol=1e-3), (out, ref)

    # Optional bf16 MXU-operand path (v6e/v7x lever); looser tolerance from bf16 rounding.
    out_bf16 = human_lstm_forward(x, params, matmul_dtype=jnp.bfloat16)
    jax.block_until_ready(out_bf16)
    assert jnp.allclose(out_bf16, ref, rtol=5e-2, atol=5e-2), (out_bf16, ref)

    # Multi-tile path: batch > 128 exercises grid > 1 with 128-row MXU batch tiles.
    batch_big = 160
    x_big = jax.random.normal(jax.random.PRNGKey(1),
                              (batch_big, seq, input_size), jnp.float32)
    out_big = human_lstm_forward(x_big, params)
    jax.block_until_ready(out_big)
    ref_big = reference_forward(x_big, params)
    assert out_big.shape == (batch_big, num_classes)
    assert jnp.allclose(out_big, ref_big, rtol=1e-3, atol=1e-3)

    print("KERNEL_OK")
</pallas_src>

<mosaic_0001>
module attributes {stable_mosaic.version = 11 : i64} {
  func.func @_human_lstm_kernel(%arg0: i32, %arg1: memref<4x8x8xf32, #tpu.memory_space<vmem>>, %arg2: memref<8x128xf32, #tpu.memory_space<vmem>>, %arg3: memref<32x128xf32, #tpu.memory_space<vmem>>, %arg4: memref<1x128xf32, #tpu.memory_space<vmem>>, %arg5: memref<32x128xf32, #tpu.memory_space<vmem>>, %arg6: memref<1x128xf32, #tpu.memory_space<vmem>>, %arg7: memref<8x128xf32, #tpu.memory_space<vmem>>) attributes {dimension_semantics = [#tpu.dimension_semantics<parallel>], iteration_bounds = array<i64: 1>, scalar_prefetch = 0 : i64, scratch_operands = 0 : i64, tpu.core_type = #tpu.core_type<tc>, window_params = [{transform_indices = @transform_0, window_bounds = array<i64: 4, 8, 8>}, {pipeline_mode = #tpu.pipeline_mode<synchronous>, transform_indices = @transform_1, window_bounds = array<i64: 8, 128>}, {pipeline_mode = #tpu.pipeline_mode<synchronous>, transform_indices = @transform_2, window_bounds = array<i64: 32, 128>}, {pipeline_mode = #tpu.pipeline_mode<synchronous>, transform_indices = @transform_3, window_bounds = array<i64: 1, 128>}, {pipeline_mode = #tpu.pipeline_mode<synchronous>, transform_indices = @transform_4, window_bounds = array<i64: 32, 128>}, {pipeline_mode = #tpu.pipeline_mode<synchronous>, transform_indices = @transform_5, window_bounds = array<i64: 1, 128>}, {transform_indices = @transform_6, window_bounds = array<i64: 8, 128>}]} {
    %c0 = arith.constant 0 : index
    %c0_0 = arith.constant 0 : index
    %c0_1 = arith.constant 0 : index
    %0 = vector.load %arg1[%c0, %c0_0, %c0_1] : memref<4x8x8xf32, #tpu.memory_space<vmem>>, vector<4x8x8xf32>
    %1 = vector.shape_cast %0 : vector<4x8x8xf32> to vector<32x8xf32>
    %c0_2 = arith.constant 0 : index
    %c0_3 = arith.constant 0 : index
    %2 = vector.load %arg2[%c0_2, %c0_3] : memref<8x128xf32, #tpu.memory_space<vmem>>, vector<8x128xf32>
    %cst = arith.constant dense<0.000000e+00> : vector<32x128xf32>
    %3 = tpu.matmul %1, %2, %cst {dimension_numbers = #tpu.dot_dimension_numbers<[1], [0], [0], [1], [0, 0, 1, 1], [], []>} : vector<32x8xf32>, vector<8x128xf32>, vector<32x128xf32> -> vector<32x128xf32>
    %c0_4 = arith.constant 0 : index
    %c0_5 = arith.constant 0 : index
    %4 = vector.load %arg4[%c0_4, %c0_5] : memref<1x128xf32, #tpu.memory_space<vmem>>, vector<1x128xf32>
    %5 = vector.broadcast %4 : vector<1x128xf32> to vector<32x128xf32>
    %6 = arith.addf %3, %5 : vector<32x128xf32>
    %c0_6 = arith.constant 0 : index
    %c0_7 = arith.constant 0 : index
    %7 = vector.load %arg3[%c0_6, %c0_7] : memref<32x128xf32, #tpu.memory_space<vmem>>, vector<32x128xf32>
    %cst_8 = arith.constant 0.000000e+00 : f32
    %8 = vector.broadcast %cst_8 : f32 to vector<8x32xf32>
    %cst_9 = arith.constant 0.000000e+00 : f32
    %9 = vector.broadcast %cst_9 : f32 to vector<8x32xf32>
    %10 = vector.extract_strided_slice %6 {offsets = [0, 0], sizes = [8, 128], strides = [1, 1]} : vector<32x128xf32> to vector<8x128xf32>
    %cst_10 = arith.constant dense<0.000000e+00> : vector<8x128xf32>
    %11 = tpu.matmul %8, %7, %cst_10 {dimension_numbers = #tpu.dot_dimension_numbers<[1], [0], [0], [1], [0, 0, 1, 1], [], []>} : vector<8x32xf32>, vector<32x128xf32>, vector<8x128xf32> -> vector<8x128xf32>
    %12 = arith.addf %10, %11 : vector<8x128xf32>
    %13 = vector.extract_strided_slice %12 {offsets = [0, 0], sizes = [8, 96], strides = [1, 1]} : vector<8x128xf32> to vector<8x96xf32>
    %14 = arith.negf %13 : vector<8x96xf32>
    %15 = math.exp %14 : vector<8x96xf32>
    %cst_11 = arith.constant 1.000000e+00 : f32
    %16 = vector.broadcast %cst_11 : f32 to vector<8x96xf32>
    %17 = arith.addf %16, %15 : vector<8x96xf32>
    %18 = arith.divf %16, %17 : vector<8x96xf32>
    %19 = vector.extract_strided_slice %18 {offsets = [0, 0], sizes = [8, 32], strides = [1, 1]} : vector<8x96xf32> to vector<8x32xf32>
    %20 = vector.extract_strided_slice %18 {offsets = [0, 32], sizes = [8, 32], strides = [1, 1]} : vector<8x96xf32> to vector<8x32xf32>
    %21 = vector.extract_strided_slice %18 {offsets = [0, 64], sizes = [8, 32], strides = [1, 1]} : vector<8x96xf32> to vector<8x32xf32>
    %22 = vector.extract_strided_slice %12 {offsets = [0, 96], sizes = [8, 32], strides = [1, 1]} : vector<8x128xf32> to vector<8x32xf32>
    %23 = math.tanh %22 : vector<8x32xf32>
    %24 = arith.mulf %20, %9 : vector<8x32xf32>
    %25 = arith.mulf %19, %23 : vector<8x32xf32>
    %26 = arith.addf %24, %25 : vector<8x32xf32>
    %27 = math.tanh %26 : vector<8x32xf32>
    %28 = arith.mulf %21, %27 : vector<8x32xf32>
    %29 = vector.extract_strided_slice %6 {offsets = [8, 0], sizes = [8, 128], strides = [1, 1]} : vector<32x128xf32> to vector<8x128xf32>
    %cst_12 = arith.constant dense<0.000000e+00> : vector<8x128xf32>
    %30 = tpu.matmul %28, %7, %cst_12 {dimension_numbers = #tpu.dot_dimension_numbers<[1], [0], [0], [1], [0, 0, 1, 1], [], []>} : vector<8x32xf32>, vector<32x128xf32>, vector<8x128xf32> -> vector<8x128xf32>
    %31 = arith.addf %29, %30 : vector<8x128xf32>
    %32 = vector.extract_strided_slice %31 {offsets = [0, 0], sizes = [8, 96], strides = [1, 1]} : vector<8x128xf32> to vector<8x96xf32>
    %33 = arith.negf %32 : vector<8x96xf32>
    %34 = math.exp %33 : vector<8x96xf32>
    %cst_13 = arith.constant 1.000000e+00 : f32
    %35 = vector.broadcast %cst_13 : f32 to vector<8x96xf32>
    %36 = arith.addf %35, %34 : vector<8x96xf32>
    %37 = arith.divf %35, %36 : vector<8x96xf32>
    %38 = vector.extract_strided_slice %37 {offsets = [0, 0], sizes = [8, 32], strides = [1, 1]} : vector<8x96xf32> to vector<8x32xf32>
    %39 = vector.extract_strided_slice %37 {offsets = [0, 32], sizes = [8, 32], strides = [1, 1]} : vector<8x96xf32> to vector<8x32xf32>
    %40 = vector.extract_strided_slice %37 {offsets = [0, 64], sizes = [8, 32], strides = [1, 1]} : vector<8x96xf32> to vector<8x32xf32>
    %41 = vector.extract_strided_slice %31 {offsets = [0, 96], sizes = [8, 32], strides = [1, 1]} : vector<8x128xf32> to vector<8x32xf32>
    %42 = math.tanh %41 : vector<8x32xf32>
    %43 = arith.mulf %39, %26 : vector<8x32xf32>
    %44 = arith.mulf %38, %42 : vector<8x32xf32>
    %45 = arith.addf %43, %44 : vector<8x32xf32>
    %46 = math.tanh %45 : vector<8x32xf32>
    %47 = arith.mulf %40, %46 : vector<8x32xf32>
    %48 = vector.extract_strided_slice %6 {offsets = [16, 0], sizes = [8, 128], strides = [1, 1]} : vector<32x128xf32> to vector<8x128xf32>
    %cst_14 = arith.constant dense<0.000000e+00> : vector<8x128xf32>
    %49 = tpu.matmul %47, %7, %cst_14 {dimension_numbers = #tpu.dot_dimension_numbers<[1], [0], [0], [1], [0, 0, 1, 1], [], []>} : vector<8x32xf32>, vector<32x128xf32>, vector<8x128xf32> -> vector<8x128xf32>
    %50 = arith.addf %48, %49 : vector<8x128xf32>
    %51 = vector.extract_strided_slice %50 {offsets = [0, 0], sizes = [8, 96], strides = [1, 1]} : vector<8x128xf32> to vector<8x96xf32>
    %52 = arith.negf %51 : vector<8x96xf32>
    %53 = math.exp %52 : vector<8x96xf32>
    %cst_15 = arith.constant 1.000000e+00 : f32
    %54 = vector.broadcast %cst_15 : f32 to vector<8x96xf32>
    %55 = arith.addf %54, %53 : vector<8x96xf32>
    %56 = arith.divf %54, %55 : vector<8x96xf32>
    %57 = vector.extract_strided_slice %56 {offsets = [0, 0], sizes = [8, 32], strides = [1, 1]} : vector<8x96xf32> to vector<8x32xf32>
    %58 = vector.extract_strided_slice %56 {offsets = [0, 32], sizes = [8, 32], strides = [1, 1]} : vector<8x96xf32> to vector<8x32xf32>
    %59 = vector.extract_strided_slice %56 {offsets = [0, 64], sizes = [8, 32], strides = [1, 1]} : vector<8x96xf32> to vector<8x32xf32>
    %60 = vector.extract_strided_slice %50 {offsets = [0, 96], sizes = [8, 32], strides = [1, 1]} : vector<8x128xf32> to vector<8x32xf32>
    %61 = math.tanh %60 : vector<8x32xf32>
    %62 = arith.mulf %58, %45 : vector<8x32xf32>
    %63 = arith.mulf %57, %61 : vector<8x32xf32>
    %64 = arith.addf %62, %63 : vector<8x32xf32>
    %65 = math.tanh %64 : vector<8x32xf32>
    %66 = arith.mulf %59, %65 : vector<8x32xf32>
    %67 = vector.extract_strided_slice %6 {offsets = [24, 0], sizes = [8, 128], strides = [1, 1]} : vector<32x128xf32> to vector<8x128xf32>
    %cst_16 = arith.constant dense<0.000000e+00> : vector<8x128xf32>
    %68 = tpu.matmul %66, %7, %cst_16 {dimension_numbers = #tpu.dot_dimension_numbers<[1], [0], [0], [1], [0, 0, 1, 1], [], []>} : vector<8x32xf32>, vector<32x128xf32>, vector<8x128xf32> -> vector<8x128xf32>
    %69 = arith.addf %67, %68 : vector<8x128xf32>
    %70 = vector.extract_strided_slice %69 {offsets = [0, 0], sizes = [8, 96], strides = [1, 1]} : vector<8x128xf32> to vector<8x96xf32>
    %71 = arith.negf %70 : vector<8x96xf32>
    %72 = math.exp %71 : vector<8x96xf32>
    %cst_17 = arith.constant 1.000000e+00 : f32
    %73 = vector.broadcast %cst_17 : f32 to vector<8x96xf32>
    %74 = arith.addf %73, %72 : vector<8x96xf32>
    %75 = arith.divf %73, %74 : vector<8x96xf32>
    %76 = vector.extract_strided_slice %75 {offsets = [0, 0], sizes = [8, 32], strides = [1, 1]} : vector<8x96xf32> to vector<8x32xf32>
    %77 = vector.extract_strided_slice %75 {offsets = [0, 32], sizes = [8, 32], strides = [1, 1]} : vector<8x96xf32> to vector<8x32xf32>
    %78 = vector.extract_strided_slice %75 {offsets = [0, 64], sizes = [8, 32], strides = [1, 1]} : vector<8x96xf32> to vector<8x32xf32>
    %79 = vector.extract_strided_slice %69 {offsets = [0, 96], sizes = [8, 32], strides = [1, 1]} : vector<8x128xf32> to vector<8x32xf32>
    %80 = math.tanh %79 : vector<8x32xf32>
    %81 = arith.mulf %77, %64 : vector<8x32xf32>
    %82 = arith.mulf %76, %80 : vector<8x32xf32>
    %83 = arith.addf %81, %82 : vector<8x32xf32>
    %84 = math.tanh %83 : vector<8x32xf32>
    %85 = arith.mulf %78, %84 : vector<8x32xf32>
    %c0_18 = arith.constant 0 : index
    %c0_19 = arith.constant 0 : index
    %86 = vector.load %arg5[%c0_18, %c0_19] : memref<32x128xf32, #tpu.memory_space<vmem>>, vector<32x128xf32>
    %cst_20 = arith.constant dense<0.000000e+00> : vector<8x128xf32>
    %87 = tpu.matmul %85, %86, %cst_20 {dimension_numbers = #tpu.dot_dimension_numbers<[1], [0], [0], [1], [0, 0, 1, 1], [], []>} : vector<8x32xf32>, vector<32x128xf32>, vector<8x128xf32> -> vector<8x128xf32>
    %c0_21 = arith.constant 0 : index
    %c0_22 = arith.constant 0 : index
    %88 = vector.load %arg6[%c0_21, %c0_22] : memref<1x128xf32, #tpu.memory_space<vmem>>, vector<1x128xf32>
    %89 = vector.broadcast %88 : vector<1x128xf32> to vector<8x128xf32>
    %90 = arith.addf %87, %89 : vector<8x128xf32>
    %cst_23 = arith.constant dense<0xFF800000> : vector<8xf32>
    %91 = vector.multi_reduction <maximumf>, %90, %cst_23 [1] : vector<8x128xf32> to vector<8xf32>
    %92 = vector.shape_cast %91 : vector<8xf32> to vector<8x1xf32>
    %93 = vector.broadcast %92 : vector<8x1xf32> to vector<8x128xf32>
    %94 = arith.subf %90, %93 : vector<8x128xf32>
    %95 = math.exp %94 : vector<8x128xf32>
    %cst_24 = arith.constant dense<0.000000e+00> : vector<8xf32>
    %96 = vector.multi_reduction <add>, %95, %cst_24 [1] : vector<8x128xf32> to vector<8xf32>
    %97 = vector.shape_cast %96 : vector<8xf32> to vector<8x1xf32>
    %98 = vector.broadcast %97 : vector<8x1xf32> to vector<8x128xf32>
    %99 = arith.divf %95, %98 : vector<8x128xf32>
    %c0_25 = arith.constant 0 : index
    %c0_26 = arith.constant 0 : index
    %100 = vector.load %arg7[%c0_25, %c0_26] : memref<8x128xf32, #tpu.memory_space<vmem>>, vector<8x128xf32>
    tpu.vector_store %arg7[%c0_25, %c0_26], %99 {strides = array<i32>} : memref<8x128xf32, #tpu.memory_space<vmem>>, vector<8x128xf32>,
    return
  }
  func.func @transform_0(%arg0: i32) -> (i32, i32, i32) {
    %c0_i32 = arith.constant 0 : i32
    %c0_i32_0 = arith.constant 0 : i32
    %c0_i32_1 = arith.constant 0 : i32
    return %c0_i32, %arg0, %c0_i32_0 : i32, i32, i32
  }
  func.func @transform_1(%arg0: i32) -> (i32, i32) {
    %c0_i32 = arith.constant 0 : i32
    %c0_i32_0 = arith.constant 0 : i32
    %c0_i32_1 = arith.constant 0 : i32
    return %c0_i32, %c0_i32_0 : i32, i32
  }
  func.func @transform_2(%arg0: i32) -> (i32, i32) {
    %c0_i32 = arith.constant 0 : i32
    %c0_i32_0 = arith.constant 0 : i32
    %c0_i32_1 = arith.constant 0 : i32
    return %c0_i32, %c0_i32_0 : i32, i32
  }
  func.func @transform_3(%arg0: i32) -> (i32, i32) {
    %c0_i32 = arith.constant 0 : i32
    %c0_i32_0 = arith.constant 0 : i32
    %c0_i32_1 = arith.constant 0 : i32
    return %c0_i32, %c0_i32_0 : i32, i32
  }
  func.func @transform_4(%arg0: i32) -> (i32, i32) {
    %c0_i32 = arith.constant 0 : i32
    %c0_i32_0 = arith.constant 0 : i32
    %c0_i32_1 = arith.constant 0 : i32
    return %c0_i32, %c0_i32_0 : i32, i32
  }
  func.func @transform_5(%arg0: i32) -> (i32, i32) {
    %c0_i32 = arith.constant 0 : i32
    %c0_i32_0 = arith.constant 0 : i32
    %c0_i32_1 = arith.constant 0 : i32
    return %c0_i32, %c0_i32_0 : i32, i32
  }
  func.func @transform_6(%arg0: i32) -> (i32, i32) {
    %c0_i32 = arith.constant 0 : i32
    %c0_i32_0 = arith.constant 0 : i32
    return %arg0, %c0_i32 : i32, i32
  }
}

</mosaic_0001>

<bundles_post_ra>
// kernel: human_lstm_forward.1
= control target key start
LH: loop header
LB: loop body
LE: loop exit
PB: predicated region body
PF: predicated region fallthrough
CT: control target
= control target key end

     0   :  { %vm35_vm0 = vcmask 64512   ;;  %v814_v0 = vmov 0.0|0.0   ;;  %vm815_vm1 = vmmov 0   ;;  %v816_v4 = vmov 0.0   ;;  %s817_s11 = smov 32   ;;  %s818_s15 = smov 64   ;;  %s962_s2 = inlined_call_operand.vmem [shape: f32[32,128], index: 2, kind: input, shape index: {}]   ;;  %s963_s1 = inlined_call_operand.vmem [shape: f32[8,128], index: 1, kind: input, shape index: {}]   ;;  %s964_s0 = inlined_call_operand.vmem [shape: f32[4,8,8], index: 0, kind: input, shape index: {}]   ;;  %s965_s3 = inlined_call_operand.vmem [shape: f32[1,128], index: 3, kind: input, shape index: {}]   ;;  %s966_s4 = inlined_call_operand.vmem [shape: f32[32,128], index: 4, kind: input, shape index: {}]   ;;  %s967_s5 = inlined_call_operand.vmem [shape: f32[1,128], index: 5, kind: input, shape index: {}]   ;;  %s968_s6 = inlined_call_operand.vmem [shape: f32[8,128], index: 6, kind: output, shape index: {}]  }
   0x1   :  { %743 = vmatprep.subr.bf16.mxu1 %v814_v0  ;;  %v133_v1 = vld [vmem:[%s962_s2] sm:$0xff]  ;;  %v134_v2 = vld [vmem:[%s962_s2 + $0x8] sm:$0xff]  ;;  %696 = vmatprep.mubr.msk.f32.mxu1 %vm815_vm1, %v816_v4  ;;  %v135_v8 = vld [vmem:[%s962_s2 + $0x10] sm:$0xff]  ;;  %vm137_vm2 = vcmask 261120  }
   0x2   :  { %v27_v3 = vld [vmem:[%s963_s1] sm:$0xff]  ;;  %v866_v5 = vpack.c.bf16 %v134_v2, %v133_v1  ;;  %v24_v7 = vld [vmem:[%s964_s0 + $0x8] sm:$0xff]  ;;  %v136_v9 = vld [vmem:[%s962_s2 + $0x18] sm:$0xff] }
   0x3   :  { %680 = vmatprep.subr.mxu0 %v27_v3  ;;  %v23_v6 = vld [vmem:[%s964_s0] sm:$0xff]  ;;  %v747_v10 = vpack.c.bf16 %v136_v9, %v135_v8  ;;  %v25_v28 = vld [vmem:[%s964_s0 + $0x10] sm:$0xff]  ;;  %v26_v29 = vld [vmem:[%s964_s0 + $0x18] sm:$0xff] }
   0x4   :  { %681 = vmatpush3.msra.mxu0 %v27_v3  ;;  %682 = vmatprep.mubr.msk.f32.mxu0 %vm35_vm0, %v23_v6  ;;  %v898_v12 = vld [vmem:[%s965_s3] ss:$0 sm:$0xff] }
   0x5   :  { %745 = vmatpush3.bf16.msra.mxu1 %v866_v5  ;;  %683 = vmatmul.mubr.msk.f32.vlgmr.msra.gmra.mrb[0].mxu0 %vm35_vm0, %v24_v7 }
   0x6   :  { %746 = vmatprep.subr.bf16.mxu1 %v814_v0  ;;  %749 = vmatprep.subr.bf16.mxu0 %v814_v0 }
   0x7   :  { %751 = vmatpush3.bf16.msra.mxu0 %v866_v5  ;;  %685 = vmatprep.mubr.msk.f32.mxu0 %vm35_vm0, %v25_v28 }
   0x8   :  { %752 = vmatprep.subr.bf16.mxu0 %v814_v0 }
   0x9   :  { %748 = vmatpush3.bf16.msra.mxu1 %v747_v10  ;;  %686 = vmatmul.mubr.msk.f32.gmra.mrb[2].mxu0 %vm35_vm0, %v26_v29 }
   0xa   :  { %755 = vmatprep.subr.bf16.mxu1 %v814_v0  ;;  %707 = vmatprep.mubr.msk.f32.mxu0 %vm815_vm1, %v816_v4 }
   0xb   :  { %754 = vmatpush3.bf16.msra.mxu0 %v747_v10 }
   0xc   :  { %697 = vmatmul.mubr.f32.vlgmr.msra.gmra.mrb[0].mxu1 %v816_v4  ;;  %761 = vmatprep.subr.bf16.mxu0 %v814_v0 }
   0xd   :  { %757 = vmatpush3.bf16.msra.mxu1 %v866_v5  ;;  %718 = vmatprep.mubr.msk.f32.mxu1 %vm815_vm1, %v816_v4 }
   0xe   :  { %758 = vmatprep.subr.bf16.mxu1 %v814_v0 }
  0x11   :  { %760 = vmatpush3.bf16.msra.mxu1 %v747_v10 }
  0x12   :  { %767 = vmatprep.subr.bf16.mxu1 %v814_v0 }
  0xd8   :  { %v684_v11 = vpop.f32.mrb[0].mxu0 }
  0xd9   :  { %v114_v13 = vpop.f32.mrb[1].mxu0  ;;  %v120_v36 = vadd.f32 %v684_v11, %v898_v12 }
  0xda   :  { %v115_v14 = vadd.f32 %v898_v12, %v114_v13 }
  0xdc   :  { %v915_v33 = vpop.f32.mrb[2].mxu0 }
  0xdd   :  { %v124_v34 = vpop.f32.mrb[3].mxu0  ;;  %v130_v9 = vadd.f32 %v915_v33, %v898_v12  ;;  %v648_v33 = vld [vmem:[%s967_s5] ss:$0 sm:$0xff] }
  0xde   :  { %v125_v54 = vadd.f32 %v898_v12, %v124_v34 }
  0xdf   :  { %v207_v15 = vpop.f32.mrb[0].mxu1 }
  0xe0   :  { %v211_v16 = vadd.f32 %v207_v15, %v115_v14  ;;  %v698_v17 = vpop.f32.mrb[1].mxu1 }
  0xe2   :  { %778 = vtanh.f32 %v211_v16  ;;  %v641_v19 = vmul.f32 -1.442695, %v211_v16 }
  0xe4   :  { %780 = vpow2.f32 %v641_v19 }
  0xec   :  { %v779_v18 = vpop.eup %778 }
  0xed   :  { %221 = vrot.lane.b32.xlu0 %v779_v18, %s817_s11 }
  0xee   :  { %v781_v20 = vpop.eup %780 }
  0xef   :  { %v215_v21 = vadd.f32 1.0, %v781_v20 }
  0xf1   :  { %782 = vrcp.f32 %v215_v21 }
  0xfb   :  { %v783_v22 = vpop.eup %782 }
  0xfc   :  { %v219_v25 = vmul.f32 0.0, %v783_v22 }
 0x15f   :  { %v222_v23 = vpop.permute.xlu0 %221 }
 0x160   :  { %v224_v24 = vmul.f32 %v783_v22, %v222_v23  ;;  %v536_v23 = vld [vmem:[%s966_s4] sm:$0xff] }
 0x162   :  { %226 = vrot.lane.b32.xlu0 %v224_v24, %s817_s11  ;;  %v537_v24 = vld [vmem:[%s966_s4 + $0x8] sm:$0xff] }
 0x1d4   :  { %v227_v26 = vpop.permute.xlu0 %226 }
 0x1d5   :  { %v229_v27 = vadd.f32 %v227_v26, %v219_v25  ;;  %v538_v25 = vld [vmem:[%s966_s4 + $0x10] sm:$0xff]  ;;  %v768_v26 = vpack.c.bf16 %v537_v24, %v536_v23 }
 0x1d7   :  { %784 = vtanh.f32 %v229_v27 }
 0x1e1   :  { %v785_v30 = vpop.eup %784 }
 0x1e2   :  { %232 = vrot.lane.b32.xlu1 %v785_v30, %s817_s11 }
 0x254   :  { %v233_v31 = vpop.permute.xlu1 %232 }
 0x255   :  { %v235_v32 = vmul.f32 %v783_v22, %v233_v31 }
 0x257   :  { %237 = vrot.lane.b32.xlu1 %v235_v32, %s818_s15 }
 0x2c9   :  { %v238_v35 = vpop.permute.xlu1 %237 }
 0x2ca   :  { %708 = vmatmul.mubr.msk.f32.vlgmr.msra.gmra.mrb[4].mxu0 %vm137_vm2, %v238_v35 }
 0x2cb   :  { %763 = vmatpush3.bf16.msra.mxu0 %v866_v5  ;;  %729 = vmatprep.mubr.msk.f32.mxu0 %vm815_vm1, %v816_v4 }
 0x2cc   :  { %764 = vmatprep.subr.bf16.mxu0 %v814_v0 }
 0x2cf   :  { %766 = vmatpush3.bf16.msra.mxu0 %v747_v10 }
 0x39d   :  { %v307_v37 = vpop.f32.mrb[4].mxu0 }
 0x39e   :  { %v311_v38 = vadd.f32 %v307_v37, %v120_v36  ;;  %v709_v39 = vpop.f32.mrb[5].mxu0 }
 0x3a0   :  { %786 = vtanh.f32 %v311_v38  ;;  %v643_v41 = vmul.f32 -1.442695, %v311_v38 }
 0x3a2   :  { %788 = vpow2.f32 %v643_v41 }
 0x3aa   :  { %v787_v40 = vpop.eup %786 }
 0x3ab   :  { %321 = vrot.lane.b32.xlu0 %v787_v40, %s817_s11 }
 0x3ac   :  { %v789_v42 = vpop.eup %788 }
 0x3ad   :  { %v315_v43 = vadd.f32 1.0, %v789_v42 }
 0x3af   :  { %790 = vrcp.f32 %v315_v43 }
 0x3b9   :  { %v791_v44 = vpop.eup %790 }
 0x3ba   :  { %v319_v47 = vmul.f32 %v791_v44, %v229_v27  ;;  %v539_v27 = vld [vmem:[%s966_s4 + $0x18] sm:$0xff] }
 0x3bb   :  { %v771_v28 = vpack.c.bf16 %v539_v27, %v538_v25 }
 0x41d   :  { %v322_v45 = vpop.permute.xlu0 %321 }
 0x41e   :  { %v324_v46 = vmul.f32 %v791_v44, %v322_v45 }
 0x420   :  { %326 = vrot.lane.b32.xlu1 %v324_v46, %s817_s11 }
 0x492   :  { %v327_v48 = vpop.permute.xlu1 %326 }
 0x493   :  { %v329_v49 = vadd.f32 %v327_v48, %v319_v47 }
 0x495   :  { %792 = vtanh.f32 %v329_v49 }
 0x49f   :  { %v793_v50 = vpop.eup %792 }
 0x4a0   :  { %332 = vrot.lane.b32.xlu0 %v793_v50, %s817_s11 }
 0x512   :  { %v333_v51 = vpop.permute.xlu0 %332 }
 0x513   :  { %v335_v52 = vmul.f32 %v791_v44, %v333_v51 }
 0x515   :  { %337 = vrot.lane.b32.xlu1 %v335_v52, %s818_s15 }
 0x587   :  { %v338_v53 = vpop.permute.xlu1 %337 }
 0x588   :  { %719 = vmatmul.mubr.msk.f32.vlgmr.msra.gmra.mrb[2].mxu1 %vm137_vm2, %v338_v53 }
 0x589   :  { %740 = vmatprep.mubr.msk.f32.mxu1 %vm815_vm1, %v816_v4  ;;  %769 = vmatpush3.bf16.msra.mxu1 %v768_v26 }
 0x58a   :  { %770 = vmatprep.subr.bf16.mxu1 %v814_v0 }
 0x58d   :  { %772 = vmatpush3.bf16.msra.mxu1 %v771_v28 }
 0x65b   :  { %v407_v55 = vpop.f32.mrb[2].mxu1 }
 0x65c   :  { %v411_v56 = vadd.f32 %v407_v55, %v125_v54  ;;  %v720_v57 = vpop.f32.mrb[3].mxu1 }
 0x65e   :  { %794 = vtanh.f32 %v411_v56  ;;  %v645_v59 = vmul.f32 -1.442695, %v411_v56 }
 0x660   :  { %796 = vpow2.f32 %v645_v59 }
 0x668   :  { %v795_v58 = vpop.eup %794 }
 0x669   :  { %421 = vrot.lane.b32.xlu0 %v795_v58, %s817_s11 }
 0x66a   :  { %v797_v60 = vpop.eup %796 }
 0x66b   :  { %v415_v61 = vadd.f32 1.0, %v797_v60 }
 0x66d   :  { %798 = vrcp.f32 %v415_v61 }
 0x677   :  { %v799_v62 = vpop.eup %798 }
 0x678   :  { %v419_v2 = vmul.f32 %v799_v62, %v329_v49 }
 0x6db   :  { %v422_v63 = vpop.permute.xlu0 %421 }
 0x6dc   :  { %v424_v1 = vmul.f32 %v799_v62, %v422_v63 }
 0x6de   :  { %426 = vrot.lane.b32.xlu1 %v424_v1, %s817_s11 }
 0x750   :  { %v427_v3 = vpop.permute.xlu1 %426 }
 0x751   :  { %v429_v4 = vadd.f32 %v427_v3, %v419_v2 }
 0x753   :  { %800 = vtanh.f32 %v429_v4 }
 0x75d   :  { %v801_v5 = vpop.eup %800 }
 0x75e   :  { %432 = vrot.lane.b32.xlu0 %v801_v5, %s817_s11 }
 0x7d0   :  { %v433_v6 = vpop.permute.xlu0 %432 }
 0x7d1   :  { %v435_v7 = vmul.f32 %v799_v62, %v433_v6 }
 0x7d3   :  { %437 = vrot.lane.b32.xlu1 %v435_v7, %s818_s15 }
 0x845   :  { %v438_v8 = vpop.permute.xlu1 %437 }
 0x846   :  { %730 = vmatmul.mubr.msk.f32.vlgmr.msra.gmra.mrb[6].mxu0 %vm137_vm2, %v438_v8 }
 0x919   :  { %v507_v10 = vpop.f32.mrb[6].mxu0 }
 0x91a   :  { %v511_v11 = vadd.f32 %v507_v10, %v130_v9  ;;  %v731_v13 = vpop.f32.mrb[7].mxu0 }
 0x91c   :  { %802 = vtanh.f32 %v511_v11  ;;  %v647_v15 = vmul.f32 -1.442695, %v511_v11 }
 0x91e   :  { %804 = vpow2.f32 %v647_v15 }
 0x926   :  { %v803_v14 = vpop.eup %802 }
 0x927   :  { %521 = vrot.lane.b32.xlu0 %v803_v14, %s817_s11 }
 0x928   :  { %v805_v16 = vpop.eup %804 }
 0x929   :  { %v515_v17 = vadd.f32 1.0, %v805_v16 }
 0x92b   :  { %806 = vrcp.f32 %v515_v17 }
 0x935   :  { %v807_v18 = vpop.eup %806 }
 0x936   :  { %v519_v21 = vmul.f32 %v807_v18, %v429_v4 }
 0x999   :  { %v522_v19 = vpop.permute.xlu0 %521 }
 0x99a   :  { %v524_v20 = vmul.f32 %v807_v18, %v522_v19 }
 0x99c   :  { %526 = vrot.lane.b32.xlu1 %v524_v20, %s817_s11 }
 0xa0e   :  { %v527_v22 = vpop.permute.xlu1 %526 }
 0xa0f   :  { %v529_v12 = vadd.f32 %v527_v22, %v519_v21 }
 0xa11   :  { %808 = vtanh.f32 %v529_v12 }
 0xa1b   :  { %v809_v29 = vpop.eup %808 }
 0xa1c   :  { %532 = vrot.lane.b32.xlu0 %v809_v29, %s817_s11 }
 0xa8e   :  { %v533_v30 = vpop.permute.xlu0 %532 }
 0xa8f   :  { %v535_v31 = vmul.f32 %v807_v18, %v533_v30 }
 0xa91   :  { %548 = vrot.lane.b32.xlu1 %v535_v31, %s818_s15 }
 0xb03   :  { %v549_v32 = vpop.permute.xlu1 %548 }
 0xb04   :  { %741 = vmatmul.mubr.msk.f32.vlgmr.msra.gmra.mrb[4].mxu1 %vm137_vm2, %v549_v32 }
 0xbd7   :  { %v618_v34 = vpop.f32.mrb[4].mxu1 }
 0xbd8   :  { %v619_v35 = vadd.f32 %v648_v33, %v618_v34  ;;  %v742_v36 = vpop.f32.mrb[5].mxu1 }
 0xbda   :  { %622 = vmax.xlane.f32.xlu0 %v619_v35 }
 0xc67   :  { %v623_v0 = vpop.xlane.xlu0 %622 }
 0xc68   :  { %v624_v37 = vsub.f32 %v619_v35, %v623_v0 }
 0xc6a   :  { %v625_v38 = vmul.f32 1.442695, %v624_v37 }
 0xc6c   :  { %810 = vpow2.f32 %v625_v38 }
 0xc76   :  { %v811_v39 = vpop.eup %810 }
 0xc77   :  { %627 = vadd.xlane.f32.xlu1 %v811_v39 }
 0xd04   :  { %v628_v40 = vpop.xlane.xlu1 %627 }
 0xd05   :  { %812 = vrcp.f32 %v628_v40 }
 0xd0f   :  { %v813_v41 = vpop.eup %812 }
 0xd10   :  { %v630_v42 = vmul.f32 %v813_v41, %v811_v39 }
 0xd12   :  { %631 = vst [vmem:[%s968_s6] sm:$0xff] %v630_v42 }

</bundles_post_ra>
